<compile_context>
chip_gen: v5e
topology: v5e:2x2
jax: 0.10.0
libtpu: 0.0.40
codegen_flags: <defaults>
</compile_context>

<pallas_src>
import functools

import jax
import jax.numpy as jnp
from jax.experimental import pallas as pl
from jax.experimental.pallas import tpu as pltpu


# ---------------------------------------------------------------------------
# Kernel
# ---------------------------------------------------------------------------
def _pooling_kernel(tok_ref, mask_ref, *rest,
                    has_cls, need_max, need_mean, need_mean_sqrt, approx_recip):
    """One (Bt, S, Dt) token block -> (Bt, n_modes, Dt) pooled block.

    Elementwise math stays in the token's native dtype (bf16 stays packed on
    v6e/v7x); only reduction accumulators are f32.  Mode order matches the
    torch concat order: [cls, max, mean, mean_sqrt_len].
    """
    if has_cls:
        cls_ref, out_ref = rest
    else:
        (out_ref,) = rest

    tok = tok_ref[...]                  # (Bt, S, Dt), native dtype
    mask = mask_ref[...]                # (Bt, S),     native dtype
    mask3 = mask[:, :, None]            # (Bt, S, 1)

    k = 0
    if has_cls:
        out_ref[:, k, :] = cls_ref[...].astype(out_ref.dtype)
        k += 1

    if need_max:
        # torch: token_embeddings[input_mask_expanded == 0] = -1e9; max over dim 1
        neg = jnp.asarray(-1e9, dtype=tok.dtype)
        filled = jnp.where(mask3 == 0, neg, tok)
        out_ref[:, k, :] = jnp.max(filled, axis=1).astype(out_ref.dtype)
        k += 1

    if need_mean or need_mean_sqrt:
        # Mask multiply in the native dtype (exact for a 0/1 mask); f32 accumulate.
        prod = tok * mask3.astype(tok.dtype)
        sum_emb = jnp.sum(prod, axis=1, dtype=jnp.float32)               # (Bt, Dt)
        sum_mask = jnp.sum(mask.astype(jnp.float32), axis=1, keepdims=True)
        sum_mask = jnp.maximum(sum_mask, jnp.float32(1e-9))              # clamp(min=1e-9)
        if need_mean:
            inv = pl.reciprocal(sum_mask, approx=approx_recip)
            out_ref[:, k, :] = (sum_emb * inv).astype(out_ref.dtype)
            k += 1
        if need_mean_sqrt:
            rs = jax.lax.rsqrt(sum_mask)
            out_ref[:, k, :] = (sum_emb * rs).astype(out_ref.dtype)
            k += 1


# ---------------------------------------------------------------------------
# Tile sizing
# ---------------------------------------------------------------------------
def _vmem_budget(budget_override=None):
    """Generation-aware (raw token-block budget, vmem_limit_bytes)."""
    try:
        cap = pltpu.get_tpu_info().vmem_capacity_bytes
    except Exception:                     # fall back conservatively
        cap = 64 * 1024 * 1024
    if cap >= 100 * 1024 * 1024:          # v5e / v6e: 128 MiB physical VMEM
        budget, limit = 6 * 1024 * 1024, 96 * 1024 * 1024
    else:                                 # v7x: 64 MiB physical VMEM
        budget, limit = 3 * 1024 * 1024, 48 * 1024 * 1024
    if budget_override is not None:
        budget = int(budget_override)
    return budget, limit


def _choose_tiles(B, S, D, itemsize, budget):
    """Pick (Bt, Dt).

    Bt is a multiple of 8 (or == B when B <= 8) so the 2-D mask/cls/output
    blocks are sublane-dense; when even the minimal Bt with the full hidden
    dim exceeds the budget, the hidden dim is tiled in 128-lane multiples
    instead of shrinking Bt below 8.  Bt is further capped so the batch axis
    gets several grid steps (pipelining; two TensorCores on v7x).
    """
    bt_min = B if B <= 8 else 8

    dt = D
    if bt_min * S * D * itemsize > budget and D > 128:
        dt = (budget // max(1, bt_min * S * itemsize)) // 128 * 128
        dt = int(min(D, max(128, dt)))

    if B <= 8:
        bt = B
    else:
        max_bt = budget // max(1, S * dt * itemsize)
        bt = int(min(B, max(8, (max_bt // 8) * 8)))
        target_nb = min(4, max(1, B // 8))            # aim for >= ~4 row blocks
        bt_cap = max(8, (B // target_nb) // 8 * 8)
        bt = min(bt, bt_cap)
    return bt, dt


# ---------------------------------------------------------------------------
# pallas_call wrapper
# ---------------------------------------------------------------------------
@functools.partial(jax.jit, static_argnames=("has_cls", "need_max", "need_mean",
                                             "need_mean_sqrt", "budget_override"))
def _pooling_pallas(token_embeddings, attention_mask, cls_token, *, has_cls,
                    need_max, need_mean, need_mean_sqrt, budget_override=None):
    B, S, D = token_embeddings.shape
    n_modes = int(has_cls) + int(need_max) + int(need_mean) + int(need_mean_sqrt)
    out_dtype = token_embeddings.dtype
    itemsize = token_embeddings.dtype.itemsize

    budget, vmem_limit = _vmem_budget(budget_override)
    bt, dt = _choose_tiles(B, S, D, itemsize, budget)
    grid = (pl.cdiv(B, bt), pl.cdiv(D, dt))

    in_specs = [
        pl.BlockSpec((bt, S, dt), lambda b, d: (b, 0, d)),   # tokens
        pl.BlockSpec((bt, S), lambda b, d: (b, 0)),          # mask (d-invariant)
    ]
    args = [token_embeddings, attention_mask]
    if has_cls:
        in_specs.append(pl.BlockSpec((bt, dt), lambda b, d: (b, d)))
        args.append(cls_token)

    # EUP approx reciprocal only when its ~2^-12 error is below the output
    # dtype's resolution (bf16/fp16); exact divide for f32 outputs.
    approx_recip = bool(out_dtype != jnp.float32)

    kernel = functools.partial(
        _pooling_kernel, has_cls=has_cls, need_max=need_max,
        need_mean=need_mean, need_mean_sqrt=need_mean_sqrt,
        approx_recip=approx_recip)

    out = pl.pallas_call(
        kernel,
        out_shape=jax.ShapeDtypeStruct((B, n_modes, D), out_dtype),
        grid_spec=pltpu.PrefetchScalarGridSpec(
            num_scalar_prefetch=0,
            grid=grid,
            in_specs=in_specs,
            out_specs=pl.BlockSpec((bt, n_modes, dt), lambda b, d: (b, 0, d)),
        ),
        compiler_params=pltpu.CompilerParams(
            dimension_semantics=("parallel", "parallel"),
            vmem_limit_bytes=vmem_limit),
        # TODO(synk): if a trace shows exposed DMA on v7x at the smaller block
        # sizes, add pipeline_mode=pl.Buffered(3) on the token in_spec.
    )(*args)

    # (B, n_modes, D) -> (B, n_modes*D): trailing dims merge contiguously, so
    # this is a free reshape equivalent to torch.cat(output_vectors, dim=1).
    return out.reshape(B, n_modes * D)


# ---------------------------------------------------------------------------
# Module-equivalent forward
# ---------------------------------------------------------------------------
def pooling_forward(features,
                    word_embedding_dimension,
                    pooling_mode_cls_token=False,
                    pooling_mode_max_tokens=False,
                    pooling_mode_mean_tokens=True,
                    pooling_mode_mean_sqrt_len_tokens=False,
                    _budget_override=None):
    """JAX/Pallas equivalent of Pooling.forward (default: mean pooling)."""
    token_embeddings = features["token_embeddings"]
    cls_token = features["cls_token_embeddings"]
    attention_mask = features["attention_mask"]
    B, S, D = token_embeddings.shape
    assert D == word_embedding_dimension

    # TODO(synk): optional 'token_weights_sum' feature (custom token weights for
    # the mean denominator) is not plumbed through; the default mask-sum path is
    # implemented.

    has_cls = bool(pooling_mode_cls_token)
    need_max = bool(pooling_mode_max_tokens)
    need_mean = bool(pooling_mode_mean_tokens)
    need_sqrt = bool(pooling_mode_mean_sqrt_len_tokens)

    if need_max or need_mean or need_sqrt:
        sentence_embedding = _pooling_pallas(
            token_embeddings, attention_mask.reshape(B, S),
            cls_token if has_cls else None,
            has_cls=has_cls, need_max=need_max, need_mean=need_mean,
            need_mean_sqrt=need_sqrt, budget_override=_budget_override)
    elif has_cls:
        sentence_embedding = cls_token          # cls-only: plain passthrough
    else:
        sentence_embedding = jnp.zeros((B, 0), token_embeddings.dtype)

    features = dict(features)
    features["sentence_embedding"] = sentence_embedding
    return features


# ---------------------------------------------------------------------------
# Pure-JAX reference mirroring the torch code (for validation)
# ---------------------------------------------------------------------------
def _reference_forward(features, **flags):
    tok = features["token_embeddings"].astype(jnp.float32)
    cls = features["cls_token_embeddings"].astype(jnp.float32)
    mask = features["attention_mask"].astype(jnp.float32)[..., None]
    outs = []
    if flags.get("pooling_mode_cls_token", False):
        outs.append(cls)
    if flags.get("pooling_mode_max_tokens", False):
        outs.append(jnp.max(jnp.where(mask == 0, -1e9, tok), axis=1))
    if flags.get("pooling_mode_mean_tokens", True) or \
       flags.get("pooling_mode_mean_sqrt_len_tokens", False):
        sum_emb = jnp.sum(tok * mask, axis=1)
        sum_mask = jnp.maximum(jnp.sum(mask, axis=1), 1e-9)
        if flags.get("pooling_mode_mean_tokens", True):
            outs.append(sum_emb / sum_mask)
        if flags.get("pooling_mode_mean_sqrt_len_tokens", False):
            outs.append(sum_emb / jnp.sqrt(sum_mask))
    return jnp.concatenate(outs, axis=1)


if __name__ == "__main__":
    key = jax.random.PRNGKey(0)
    k_tok, k_big = jax.random.split(key)

    # ---- small default-config test (mean pooling only), f32 -----------------
    B, S, D = 2, 8, 32
    token_embeddings = jax.random.normal(k_tok, (B, S, D), dtype=jnp.float32)
    lengths = jnp.array([8, 5], dtype=jnp.int32)
    attention_mask = (jnp.arange(S)[None, :] < lengths[:, None]).astype(jnp.float32)
    cls_token = token_embeddings[:, 0, :]
    features = {"token_embeddings": token_embeddings,
                "cls_token_embeddings": cls_token,
                "attention_mask": attention_mask}

    out_default = pooling_forward(features, D)
    emb_default = jax.block_until_ready(out_default["sentence_embedding"])
    assert emb_default.shape == (B, D)
    assert jnp.allclose(emb_default, _reference_forward(features),
                        atol=1e-5, rtol=1e-5)

    # ---- all pooling modes enabled (cls + max + mean + mean_sqrt), f32 ------
    flags = dict(pooling_mode_cls_token=True, pooling_mode_max_tokens=True,
                 pooling_mode_mean_tokens=True,
                 pooling_mode_mean_sqrt_len_tokens=True)
    out_all = pooling_forward(features, D, **flags)
    emb_all = jax.block_until_ready(out_all["sentence_embedding"])
    assert emb_all.shape == (B, 4 * D)
    assert jnp.allclose(emb_all, _reference_forward(features, **flags),
                        atol=1e-5, rtol=1e-5)

    # ---- multi-block grid (batch tiling + hidden-dim tiling): tiny artificial
    #      VMEM budget exercises the (b, d) grid at small shapes --------------
    B2, S2, D2 = 16, 8, 256
    k_t2, k_l2 = jax.random.split(k_big)
    tok2 = jax.random.normal(k_t2, (B2, S2, D2), dtype=jnp.float32)
    len2 = jax.random.randint(k_l2, (B2,), 1, S2 + 1)
    mask2 = (jnp.arange(S2)[None, :] < len2[:, None]).astype(jnp.float32)
    feats2 = {"token_embeddings": tok2, "cls_token_embeddings": tok2[:, 0, :],
              "attention_mask": mask2}
    flags2 = dict(pooling_mode_max_tokens=True, pooling_mode_mean_tokens=True)
    out2 = pooling_forward(feats2, D2, _budget_override=8 * 1024, **flags2)
    emb2 = jax.block_until_ready(out2["sentence_embedding"])
    assert emb2.shape == (B2, 2 * D2)
    assert jnp.allclose(emb2, _reference_forward(feats2, **flags2),
                        atol=1e-5, rtol=1e-5)

    # ---- bf16 inputs: native-dtype elementwise math + approx reciprocal -----
    feats_bf16 = {"token_embeddings": token_embeddings.astype(jnp.bfloat16),
                  "cls_token_embeddings": cls_token.astype(jnp.bfloat16),
                  "attention_mask": attention_mask}
    out_bf16 = pooling_forward(feats_bf16, D, **flags)
    emb_bf16 = jax.block_until_ready(
        out_bf16["sentence_embedding"]).astype(jnp.float32)
    ref_bf16 = _reference_forward(feats_bf16, **flags)
    assert emb_bf16.shape == (B, 4 * D)
    assert jnp.allclose(emb_bf16, ref_bf16, atol=2e-2, rtol=2e-2)

    print("KERNEL_OK")
</pallas_src>

<mosaic_0001>
module attributes {stable_mosaic.version = 11 : i64} {
  func.func @_pooling_kernel(%arg0: i32, %arg1: i32, %arg2: memref<2x8x32xf32, #tpu.memory_space<vmem>>, %arg3: memref<2x8xf32, #tpu.memory_space<vmem>>, %arg4: memref<2x1x32xf32, #tpu.memory_space<vmem>>) attributes {dimension_semantics = [#tpu.dimension_semantics<parallel>, #tpu.dimension_semantics<parallel>], iteration_bounds = array<i64: 1, 1>, scalar_prefetch = 0 : i64, scratch_operands = 0 : i64, tpu.core_type = #tpu.core_type<tc>, window_params = [{transform_indices = @transform_0, window_bounds = array<i64: 2, 8, 32>}, {transform_indices = @transform_1, window_bounds = array<i64: 2, 8>}, {transform_indices = @transform_2, window_bounds = array<i64: 2, 1, 32>}]} {
    %c0 = arith.constant 0 : index
    %c0_0 = arith.constant 0 : index
    %c0_1 = arith.constant 0 : index
    %0 = vector.load %arg2[%c0, %c0_0, %c0_1] : memref<2x8x32xf32, #tpu.memory_space<vmem>>, vector<2x8x32xf32>
    %c0_2 = arith.constant 0 : index
    %c0_3 = arith.constant 0 : index
    %1 = vector.load %arg3[%c0_2, %c0_3] : memref<2x8xf32, #tpu.memory_space<vmem>>, vector<2x8xf32>
    %2 = vector.shape_cast %1 : vector<2x8xf32> to vector<2x8x1xf32>
    %3 = vector.broadcast %2 : vector<2x8x1xf32> to vector<2x8x32xf32>
    %4 = arith.mulf %0, %3 : vector<2x8x32xf32>
    %cst = arith.constant dense<0.000000e+00> : vector<2x32xf32>
    %5 = vector.multi_reduction <add>, %4, %cst [1] : vector<2x8x32xf32> to vector<2x32xf32>
    %cst_4 = arith.constant dense<0.000000e+00> : vector<2xf32>
    %6 = vector.multi_reduction <add>, %1, %cst_4 [1] : vector<2x8xf32> to vector<2xf32>
    %7 = vector.shape_cast %6 : vector<2xf32> to vector<2x1xf32>
    %cst_5 = arith.constant 9.99999971E-10 : f32
    %8 = vector.broadcast %cst_5 : f32 to vector<2x1xf32>
    %9 = arith.maximumf %7, %8 : vector<2x1xf32>
    %10 = tpu.reciprocal %9 : vector<2x1xf32> -> vector<2x1xf32>
    %11 = vector.broadcast %10 : vector<2x1xf32> to vector<2x32xf32>
    %12 = arith.mulf %5, %11 : vector<2x32xf32>
    %c0_6 = arith.constant 0 : index
    %c0_7 = arith.constant 0 : index
    %c0_8 = arith.constant 0 : index
    %13 = vector.load %arg4[%c0_6, %c0_7, %c0_8] : memref<2x1x32xf32, #tpu.memory_space<vmem>>, vector<2x1x32xf32>
    %14 = vector.shape_cast %13 : vector<2x1x32xf32> to vector<2x32xf32>
    %15 = vector.shape_cast %12 : vector<2x32xf32> to vector<2x1x32xf32>
    tpu.vector_store %arg4[%c0_6, %c0_7, %c0_8], %15 {strides = array<i32>} : memref<2x1x32xf32, #tpu.memory_space<vmem>>, vector<2x1x32xf32>,
    return
  }
  func.func @transform_0(%arg0: i32, %arg1: i32) -> (i32, i32, i32) {
    %c0_i32 = arith.constant 0 : i32
    %c0_i32_0 = arith.constant 0 : i32
    return %arg0, %c0_i32, %arg1 : i32, i32, i32
  }
  func.func @transform_1(%arg0: i32, %arg1: i32) -> (i32, i32) {
    %c0_i32 = arith.constant 0 : i32
    %c0_i32_0 = arith.constant 0 : i32
    return %arg0, %c0_i32 : i32, i32
  }
  func.func @transform_2(%arg0: i32, %arg1: i32) -> (i32, i32, i32) {
    %c0_i32 = arith.constant 0 : i32
    %c0_i32_0 = arith.constant 0 : i32
    return %arg0, %c0_i32, %arg1 : i32, i32, i32
  }
}

</mosaic_0001>

<bundles_post_ra>
// kernel: _pooling_pallas.1
= control target key start
LH: loop header
LB: loop body
LE: loop exit
PB: predicated region body
PF: predicated region fallthrough
CT: control target
= control target key end

     0   :  { %7 = vsyncpa [#allocation3], 0  ;;  %s248_s0 = inlined_call_operand.hbm [shape: f32[2,8,32], index: 0, kind: input, shape index: {}]   ;;  %s249_s1 = inlined_call_operand.hbm [shape: f32[2,8], index: 1, kind: input, shape index: {}]   ;;  %s250_s2 = inlined_call_operand.hbm [shape: f32[2,1,32], index: 2, kind: output, shape index: {}]  }
   0x1   :  { %8 = vsyncpa [#allocation6], 0 }
   0x2   :  { %9 = vsyncpa [#allocation4], 0  ;;  %s14_s11 = sshll.u32 %s248_s0, 4  ;;  %s213_s12 = smov [#allocation2]   ;;  %s15_s11 = int_to_ptr.hbm [resolvable:$true] %s14_s11 }
   0x3   :  { %s16_s13 = sshll.u32 %s213_s12, 4  ;;  %s28_s16 = sshll.u32 %s249_s1, 4  ;;  %s17_s13 = int_to_ptr.vmem [resolvable:$true] %s16_s13  ;;  %s29_s16 = int_to_ptr.hbm [resolvable:$true] %s28_s16 }
   0x4   :  { %s214_s17 = smov 128   ;;  %s215_s18 = smov 8  }
   0x5   :  { %22 = dma.hbm_to_vmem [thread:$0]  %s15_s11, 256, %s17_s13, [#allocation3], %s214_s17, %s214_s17, %s215_s18  }
   0x6   :  { %s216_s19 = smov [#allocation5]  }
   0x7   :  { %s30_s20 = sshll.u32 %s216_s19, 4  ;;  %s31_s20 = int_to_ptr.vmem [resolvable:$true] %s30_s20 }
   0x8   :  { %33 = dma.hbm_to_vmem [thread:$0]  %s29_s16, 32, %s31_s20, [#allocation6]  }
   0x9   :  { %207 = dma.done.wait [#allocation3], 256  }
   0xa   :  { %208 = vsyncadd [#allocation3], 4294967040 }
   0xb   :  { %209 = dma.done.wait [#allocation6], 32  }
   0xc   :  { %210 = vsyncadd [#allocation6], 4294967264  ;;  %v46_v0 = vlaneseq  ;;  %vm76_vm0 = vcmask 58368   ;;  %v44_v2 = vld [vmem:[#allocation5] sm:$0x3]  ;;  %v43_v8 = vld [vmem:[#allocation2 + $0x8] sm:$0xff] }
   0xd   :  { %v77_v3 = vsel %vm76_vm0, %v44_v2, 0.0  ;;  %v52_v4 = vperm.slane %v44_v2, 1  ;;  %v45_v5 = vperm.slane %v44_v2, 0  ;;  %vm61_vm1 = vcmask 261120   ;;  %v42_v25 = vld [vmem:[#allocation2] sm:$0xff]  ;;  %s217_s0 = smov [#allocation7]  }
   0xe   :  { %v47_v1 = vshrl.u32 %v46_v0, 7  ;;  %78 = vadd.xlane.f32.xlu0 %v77_v3  ;;  %vm101_vm6 = vcmask 253952   ;;  %s108_s1 = sshll.u32 %s217_s0, 4  ;;  %s110_s23 = sshll.u32 %s250_s2, 4  ;;  %s109_s1 = int_to_ptr.vmem [resolvable:$true] %s108_s1  ;;  %s111_s23 = int_to_ptr.hbm [resolvable:$true] %s110_s23 }
   0xf   :  { %s218_s24 = smov 16   ;;  %s219_s25 = smov 1  }
  0x10   :  { %132 = vset.pattern.permute.xlu1 %v47_v1  ;;  %131 = vset.pattern.permute.xlu0 %v47_v1 }
  0x18   :  { %57 = vperm.xlu1 %132, %v52_v4  }
  0x22   :  { %50 = vperm.xlu0 %131, %v45_v5  }
  0x81   :  { %v79_v6 = vpop.xlane.xlu0 %78 }
  0x82   :  { %v80_v7 = vmax.f32 %v79_v6, 1e-09 }
  0x84   :  { %133 = vrcp.f32 %v80_v7  ;;  %v92_v18 = vand.u32 2147483648, %v80_v7  ;;  %v90_v21 = vand.u32 2147483647, %v80_v7  ;;  %vm86_vm3 = vweird.f32 %v80_v7 }
  0x86   :  { %v93_v24 = vor.u32 1.1754944e-38, %v92_v18  ;;  %vm91_vm5 = vcmp.eq.f32.partialorder %v90_v21, 8.507059e+37 }
  0x8a   :  { %v58_v9 = vpop.permute.xlu1 %57  ;;  %v134_v13 = vpop.eup %133 }
  0x8b   :  { %v60_v10 = vmul.f32 %v58_v9, %v43_v8  ;;  %v82_v15 = vmul.f32 %v134_v13, %v80_v7  ;;  %vm87_vm2 = vweird.f32 %v134_v13 }
  0x8c   :  { %vm88_vm4 = vmor %vm86_vm3, %vm87_vm2 }
  0x8d   :  { %v69_v11 = vsel %vm61_vm1, %v60_v10, 0.0  ;;  %v83_v17 = vsub.f32 1.0, %v82_v15 }
  0x8e   :  { %v70_v12 = vrot.slane %v69_v11, 4 }
  0x8f   :  { %v84_v20 = vmul.f32 %v134_v13, %v83_v17 }
  0x90   :  { %v71_v14 = vadd.f32 %v70_v12, %v69_v11 }
  0x91   :  { %v85_v23 = vadd.f32 %v134_v13, %v84_v20 }
  0x92   :  { %v72_v16 = vrot.slane %v71_v14, 2 }
  0x93   :  { %v89_v26 = vsel %vm88_vm4, %v134_v13, %v85_v23 }
  0x94   :  { %v73_v19 = vadd.f32 %v72_v16, %v71_v14  ;;  %v94_v28 = vsel %vm91_vm5, %v93_v24, %v89_v26  ;;  %v51_v29 = vpop.permute.xlu0 %50 }
  0x95   :  { %v96_v30 = vrot.slane %v94_v28, 1  ;;  %v59_v31 = vmul.f32 %v51_v29, %v42_v25 }
  0x96   :  { %v74_v22 = vrot.slane %v73_v19, 1 }
  0x97   :  { %v62_v33 = vsel %vm61_vm1, %v59_v31, 0.0 }
  0x98   :  { %v75_v27 = vadd.f32 %v74_v22, %v73_v19  ;;  %v63_v34 = vrot.slane %v62_v33, 4 }
  0x9a   :  { %v100_v32 = vmul.f32 %v96_v30, %v75_v27  ;;  %v64_v35 = vadd.f32 %v63_v34, %v62_v33 }
  0x9c   :  { %103 = vst.msk [vmem:[#allocation7 + $0x1] sm:$0x1] %vm101_vm6, %v100_v32  ;;  %v65_v36 = vrot.slane %v64_v35, 2 }
  0x9e   :  { %v66_v37 = vadd.f32 %v65_v36, %v64_v35 }
  0xa0   :  { %v67_v38 = vrot.slane %v66_v37, 1 }
  0xa2   :  { %v68_v39 = vadd.f32 %v67_v38, %v66_v37 }
  0xa4   :  { %v99_v40 = vmul.f32 %v94_v28, %v68_v39 }
  0xa6   :  { %102 = vst.msk [vmem:[#allocation7] sm:$0x1] %vm101_vm6, %v99_v40 }
  0xa7   :  { %116 = dma.vmem_to_hbm [thread:$0]  %s109_s1, 32, %s111_s23, [#allocation4], %s218_s24, %s218_s24, %s219_s25  }
  0xa8   :  { %211 = dma.done.wait [#allocation4], 32  }
  0xa9   :  { %212 = vsyncadd [#allocation4], 4294967264 }
  0xaa   :  { %121 = vsyncpa [#allocation3], 1 }
  0xab   :  { %122 = vsyncpa [#allocation6], 1 }
  0xac   :  { %123 = vsyncpa [#allocation4], 1 }

</bundles_post_ra>
